<compile_context>
chip_gen: v7x
topology: tpu7x:2x2x1
jax: 0.10.0
libtpu: 0.0.40
codegen_flags: <defaults>
</compile_context>

<pallas_src>
from functools import partial

import jax
import jax.numpy as jnp
from jax.experimental import pallas as pl
from jax.experimental.pallas import tpu as pltpu

# torch: self.shift_direction = (random.random() > 0.5) * 2 - 1  (either +1 or -1);
# fixed deterministically here and plumbed as a static argument.
SHIFT_DIRECTION = 1

M, K, N = 196, 384, 256        # rows = hg*o, contraction = c*p*kh, out channels


def matmul_kernel(a_ref, b_ref, o_ref):
    # Single invocation: full (196,384)x(384,256) bf16 matmul, f32 accumulation.
    o_ref[...] = jnp.dot(a_ref[...], b_ref[...],
                         preferred_element_type=jnp.float32)


_COST = pl.CostEstimate(
    flops=2 * M * K * N,                                   # ~38.5 MFLOP
    transcendentals=0,
    bytes_accessed=M * K * 2 + K * N * 2 + M * N * 4,      # bf16 in, f32 out
)


def pallas_matmul(a_bf16, b_bf16):
    # Grid collapsed to one step; everything lives fully in VMEM.  No
    # dimension_semantics needed (single step; nothing to shard across TCs).
    return pl.pallas_call(
        matmul_kernel,
        out_shape=jax.ShapeDtypeStruct((M, N), jnp.float32),
        in_specs=[
            pl.BlockSpec(memory_space=pltpu.MemorySpace.VMEM),
            pl.BlockSpec(memory_space=pltpu.MemorySpace.VMEM),
        ],
        out_specs=pl.BlockSpec(memory_space=pltpu.MemorySpace.VMEM),
        cost_estimate=_COST,
    )(a_bf16, b_bf16)


def prep_weight(w):
    # Hoisted out of the per-call path (weights are static):
    # (256,64,2,3) -> (384,256) bf16, column order (c, p, kh) to match im2col.
    return jnp.transpose(w.reshape(N, K)).astype(jnp.bfloat16)


def build_im2col(x, shift):
    # Glue mirroring the torch permute / reshape / roll / unfold data movement.
    # Kept in (jitted) XLA: the awkward 14/28/64 dims make this relayout a poor
    # fit for in-kernel VMEM tiling; the Pallas call only sees the lane-dense
    # (196, 384) result.
    t = jnp.einsum('ilkj->iklj', x)                 # (1, 28, 64, 14)  [n, h, c, w]
    t = jnp.roll(t, shift, axis=1)                  # roll along H=28
    t = t.reshape(1, 14, 2, 64, 14)                 # (1, hg, p, c, w)
    t = jnp.roll(t, shift, axis=4)                  # roll along W=14
    # unfold kernel (3,1), padding (1,0) along the 14-long axis
    tp = jnp.pad(t, ((0, 0), (0, 0), (0, 0), (0, 0), (1, 1)))
    # A[(hg,o),(c,p,kh)] = tp[0, hg, p, c, o + kh]
    T = jnp.stack([tp[0, :, :, :, kh:kh + 14] for kh in range(3)], axis=-1)  # (14,2,64,14,3)
    T = jnp.transpose(T, (0, 3, 2, 1, 4))           # (hg, o, c, p, kh)
    return T.reshape(M, K)                          # (196, 384)


@partial(jax.jit, static_argnames=("shift",))
def kernel_generated_3_forward(x, b_prepped, shift=SHIFT_DIRECTION):
    a = build_im2col(x, shift).astype(jnp.bfloat16)  # (196, 384) bf16
    y_flat = pallas_matmul(a, b_prepped)             # (196, 256) f32, lane-dense
    # y_flat[hg*14 + o, i] == y[0, i, hg, o]
    return jnp.transpose(y_flat.reshape(14, 14, N), (2, 0, 1))[None]  # (1,256,14,14)


# ----------------------------- references ----------------------------------

def ref_forward(x, w, shift=SHIFT_DIRECTION):
    # Pure-JAX f32 mirror of the exact PyTorch op sequence, for validation.
    t = jnp.einsum('ilkj->iklj', x)
    t = t.reshape(1, 14, 2, 64, 14).reshape(1, 28, 64, 14)
    t = jnp.roll(t, shift, axis=1)
    t = t.reshape(1, 14, 2, 64, 14)
    t = jnp.roll(t, shift, axis=4)
    t = t.reshape(1, 1792, 14, 1)
    # torch.nn.functional.unfold(t, (3, 1), padding=(1, 0))
    tp = jnp.pad(t, ((0, 0), (0, 0), (1, 1), (0, 0)))
    cols = jnp.stack([tp[:, :, l:l + 3, 0] for l in range(14)], axis=-1)  # (1,1792,3,14)
    t = cols.reshape(1, 5376, 14)
    t = t.reshape(1, 14, 2, 64, 3, 14)
    t = jnp.transpose(t, (0, 1, 3, 2, 4, 5))
    return jnp.einsum('mnjklo,ijkl->mino', t, w,
                      precision=jax.lax.Precision.HIGHEST)


def matched_precision_ref(x, w, shift=SHIFT_DIRECTION):
    # Same bf16 input rounding / f32 accumulation as the Pallas path, computed
    # with XLA: isolates the matmul for a tight numerical check.
    a = build_im2col(x, shift).astype(jnp.bfloat16).astype(jnp.float32)
    b = prep_weight(w).astype(jnp.float32)
    y = jnp.dot(a, b, precision=jax.lax.Precision.HIGHEST)
    return jnp.transpose(y.reshape(14, 14, N), (2, 0, 1))[None]


if __name__ == "__main__":
    key = jax.random.PRNGKey(0)
    kx, kw = jax.random.split(key)
    # Shapes are fixed by the module's hard-coded reshapes:
    x = jax.random.normal(kx, (1, 64, 28, 14), dtype=jnp.float32)
    w = jax.random.normal(kw, (256, 64, 2, 3), dtype=jnp.float32)

    b = prep_weight(w)  # one-time weight prep, outside the forward path
    y = jax.block_until_ready(kernel_generated_3_forward(x, b))
    assert y.shape == (1, 256, 14, 14), y.shape

    # (1) Tight check vs a matched-precision (bf16-in / f32-acc) reference:
    #     validates the Pallas matmul itself.
    y_mref = jax.block_until_ready(matched_precision_ref(x, w))
    err_m = float(jnp.max(jnp.abs(y - y_mref)))
    assert jnp.allclose(y, y_mref, rtol=1e-2, atol=1e-2), err_m

    # (2) Fidelity check vs the exact f32 torch-mirror reference: validates the
    #     roll/unfold/im2col data movement (bf16 input rounding over K=384
    #     contributes max-abs error ~0.3 on N(0,1) data, far below any
    #     data-movement bug which would mismatch by O(20)).
    y_ref = jax.block_until_ready(ref_forward(x, w))
    err_f = float(jnp.max(jnp.abs(y - y_ref)))
    assert jnp.allclose(y, y_ref, rtol=3e-2, atol=5e-1), err_f

    print("KERNEL_OK")
</pallas_src>

<mosaic_0001>
module attributes {stable_mosaic.version = 11 : i64} {
  func.func @matmul_kernel(%arg0: memref<196x384xbf16, #tpu.memory_space<vmem>>, %arg1: memref<384x256xbf16, #tpu.memory_space<vmem>>, %arg2: memref<196x256xf32, #tpu.memory_space<vmem>>) attributes {dimension_semantics = [], scalar_prefetch = 0 : i64, scratch_operands = 0 : i64, tpu.core_type = #tpu.core_type<tc>} {
    %c0 = arith.constant 0 : index
    %c0_0 = arith.constant 0 : index
    %0 = vector.load %arg0[%c0, %c0_0] : memref<196x384xbf16, #tpu.memory_space<vmem>>, vector<196x384xbf16>
    %c0_1 = arith.constant 0 : index
    %c0_2 = arith.constant 0 : index
    %1 = vector.load %arg1[%c0_1, %c0_2] : memref<384x256xbf16, #tpu.memory_space<vmem>>, vector<384x256xbf16>
    %cst = arith.constant dense<0.000000e+00> : vector<196x256xf32>
    %2 = tpu.matmul %0, %1, %cst {dimension_numbers = #tpu.dot_dimension_numbers<[1], [0], [0], [1], [0, 0, 1, 1], [], []>} : vector<196x384xbf16>, vector<384x256xbf16>, vector<196x256xf32> -> vector<196x256xf32>
    %c0_3 = arith.constant 0 : index
    %c0_4 = arith.constant 0 : index
    %3 = vector.load %arg2[%c0_3, %c0_4] : memref<196x256xf32, #tpu.memory_space<vmem>>, vector<196x256xf32>
    tpu.vector_store %arg2[%c0_3, %c0_4], %2 {strides = array<i32>} : memref<196x256xf32, #tpu.memory_space<vmem>>, vector<196x256xf32>,
    return
  }
}

</mosaic_0001>

<bundles_post_ra>
// kernel: kernel_generated_3_forward.1
= control target key start
LH: loop header
LB: loop body
LE: loop exit
PB: predicated region body
PF: predicated region fallthrough
CT: control target
= control target key end

     0   :  { %v1190_v1 = vmov 0   ;;  %s1627_s1 = inlined_call_operand.vmem [shape: bf16[384,256], index: 1, kind: input, shape index: {}]   ;;  %s1628_s0 = inlined_call_operand.vmem [shape: bf16[196,384], index: 0, kind: input, shape index: {}]   ;;  %s1629_s2 = inlined_call_operand.vmem [shape: f32[196,256], index: 2, kind: output, shape index: {}]  }
   0x1   :  { %v1067_v0 = vld [vmem:[%s1627_s1 + $0x4] ss:$8 sps:$4 sm:$0xff]   ;;  %746 = vmatprep.mubr.bf16.mxu0 %v1190_v1  ;;  %v1069_v2 = vld [vmem:[%s1627_s1] ss:$8 sps:$4 sm:$0xff]   ;;  %v1070_v3 = vld [vmem:[%s1627_s1 + $0x14] ss:$8 sps:$4 sm:$0xff]  }
   0x2   :  { %553 = vmatprep.subr.bf16.mxu1 %v1067_v0  ;;  %v1072_v4 = vld [vmem:[%s1627_s1 + $0x10] ss:$8 sps:$4 sm:$0xff]   ;;  %v1073_v5 = vld [vmem:[%s1627_s1 + $0x24] ss:$8 sps:$4 sm:$0xff]   ;;  %v1075_v6 = vld [vmem:[%s1627_s1 + $0x20] ss:$8 sps:$4 sm:$0xff]  }
   0x3   :  { %554 = vmatpush1.bf16.msra.mxu1 %v1069_v2  ;;  %v1076_v7 = vld [vmem:[%s1627_s1 + $0x34] ss:$8 sps:$4 sm:$0xff]   ;;  %v1078_v8 = vld [vmem:[%s1627_s1 + $0x30] ss:$8 sps:$4 sm:$0xff]   ;;  %v1091_v9 = vld [vmem:[%s1627_s1 + $0x104] ss:$8 sps:$4 sm:$0xff]  }
   0x4   :  { %555 = vmatprep.subr.bf16.mxu1 %v1070_v3  ;;  %v1093_v10 = vld [vmem:[%s1627_s1 + $0x100] ss:$8 sps:$4 sm:$0xff]   ;;  %v1079_v11 = vld [vmem:[%s1627_s1 + $0x44] ss:$8 sps:$4 sm:$0xff]   ;;  %714 = vmatprep.subr.bf16.mxu0 %v1091_v9  ;;  %v1097_v12 = vld [vmem:[%s1627_s1 + $0x114] ss:$8 sps:$4 sm:$0xff]  }
   0x5   :  { %715 = vmatpush1.bf16.msra.mxu0 %v1093_v10  ;;  %v1099_v13 = vld [vmem:[%s1627_s1 + $0x110] ss:$8 sps:$4 sm:$0xff]   ;;  %v1081_v14 = vld [vmem:[%s1627_s1 + $0x40] ss:$8 sps:$4 sm:$0xff]   ;;  %v1082_v15 = vld [vmem:[%s1627_s1 + $0x54] ss:$8 sps:$4 sm:$0xff]  }
   0x6   :  { %716 = vmatprep.subr.bf16.mxu0 %v1097_v12  ;;  %v1103_v16 = vld [vmem:[%s1627_s1 + $0x124] ss:$8 sps:$4 sm:$0xff]   ;;  %v1105_v17 = vld [vmem:[%s1627_s1 + $0x120] ss:$8 sps:$4 sm:$0xff]   ;;  %v1084_v18 = vld [vmem:[%s1627_s1 + $0x50] ss:$8 sps:$4 sm:$0xff]  }
   0x7   :  { %556 = vmatpush1.bf16.msra.mxu1 %v1072_v4  ;;  %v1109_v19 = vld [vmem:[%s1627_s1 + $0x134] ss:$8 sps:$4 sm:$0xff]   ;;  %v1085_v20 = vld [vmem:[%s1627_s1 + $0x64] ss:$8 sps:$4 sm:$0xff]   ;;  %v1111_v21 = vld [vmem:[%s1627_s1 + $0x130] ss:$8 sps:$4 sm:$0xff]  }
   0x8   :  { %557 = vmatprep.subr.bf16.mxu1 %v1073_v5  ;;  %v1087_v22 = vld [vmem:[%s1627_s1 + $0x60] ss:$8 sps:$4 sm:$0xff]   ;;  %v1115_v23 = vld [vmem:[%s1627_s1 + $0x144] ss:$8 sps:$4 sm:$0xff]   ;;  %v1088_v24 = vld [vmem:[%s1627_s1 + $0x74] ss:$8 sps:$4 sm:$0xff]  }
   0x9   :  { %717 = vmatpush1.bf16.msra.mxu0 %v1099_v13  ;;  %v1117_v25 = vld [vmem:[%s1627_s1 + $0x140] ss:$8 sps:$4 sm:$0xff]   ;;  %v1090_v26 = vld [vmem:[%s1627_s1 + $0x70] ss:$8 sps:$4 sm:$0xff]   ;;  %v1121_v27 = vld [vmem:[%s1627_s1 + $0x154] ss:$8 sps:$4 sm:$0xff]  }
   0xa   :  { %718 = vmatprep.subr.bf16.mxu0 %v1103_v16  ;;  %v1094_v28 = vld [vmem:[%s1627_s1 + $0x84] ss:$8 sps:$4 sm:$0xff]   ;;  %v1123_v29 = vld [vmem:[%s1627_s1 + $0x150] ss:$8 sps:$4 sm:$0xff]   ;;  %v1096_v30 = vld [vmem:[%s1627_s1 + $0x80] ss:$8 sps:$4 sm:$0xff]  }
   0xb   :  { %558 = vmatpush1.bf16.msra.mxu1 %v1075_v6  ;;  %v1127_v31 = vld [vmem:[%s1627_s1 + $0x164] ss:$8 sps:$4 sm:$0xff]   ;;  %v1100_v32 = vld [vmem:[%s1627_s1 + $0x94] ss:$8 sps:$4 sm:$0xff]   ;;  %v1102_v33 = vld [vmem:[%s1627_s1 + $0x90] ss:$8 sps:$4 sm:$0xff]  }
   0xc   :  { %559 = vmatprep.subr.bf16.mxu1 %v1076_v7  ;;  %v1129_v34 = vld [vmem:[%s1627_s1 + $0x160] ss:$8 sps:$4 sm:$0xff]   ;;  %v1142_v35 = vld [vmem:[%s1628_s0 + $0x4] ss:$12 sps:$4 sm:$0xff]   ;;  %v1133_v36 = vld [vmem:[%s1627_s1 + $0x174] ss:$8 sps:$4 sm:$0xff]  }
   0xd   :  { %719 = vmatpush1.bf16.msra.mxu0 %v1105_v17  ;;  %v1106_v37 = vld [vmem:[%s1627_s1 + $0xa4] ss:$8 sps:$4 sm:$0xff]   ;;  %585 = vmatprep.mubr.bf16.mxu1 %v1142_v35  ;;  %v1135_v38 = vld [vmem:[%s1627_s1 + $0x170] ss:$8 sps:$4 sm:$0xff]   ;;  %v1108_v39 = vld [vmem:[%s1627_s1 + $0xa0] ss:$8 sps:$4 sm:$0xff]  }
   0xe   :  { %720 = vmatprep.subr.bf16.mxu0 %v1109_v19  ;;  %v1112_v40 = vld [vmem:[%s1627_s1 + $0xb4] ss:$8 sps:$4 sm:$0xff]   ;;  %v1114_v42 = vld [vmem:[%s1627_s1 + $0xb0] ss:$8 sps:$4 sm:$0xff]   ;;  %v1118_v43 = vld [vmem:[%s1627_s1 + $0xc4] ss:$8 sps:$4 sm:$0xff]  }
   0xf   :  { %560 = vmatpush1.bf16.msra.mxu1 %v1078_v8  ;;  %v1139_v41 = vld [vmem:[%s1628_s0 + $0x8] ss:$12 sps:$4 sm:$0xff]   ;;  %v1143_v46 = vld [vmem:[%s1628_s0 + $0x20] ss:$12 sps:$4 sm:$0xff]   ;;  %v1126_v47 = vld [vmem:[%s1627_s1 + $0xd0] ss:$8 sps:$4 sm:$0xff]  }
  0x10   :  { %561 = vmatprep.subr.bf16.mxu1 %v1079_v11  ;;  %v1120_v44 = vld [vmem:[%s1627_s1 + $0xc0] ss:$8 sps:$4 sm:$0xff]   ;;  %v1124_v45 = vld [vmem:[%s1627_s1 + $0xd4] ss:$8 sps:$4 sm:$0xff]   ;;  %v1130_v48 = vld [vmem:[%s1627_s1 + $0xe4] ss:$8 sps:$4 sm:$0xff]  }
  0x11   :  { %721 = vmatpush1.bf16.msra.mxu0 %v1111_v21  ;;  %v1132_v49 = vld [vmem:[%s1627_s1 + $0xe0] ss:$8 sps:$4 sm:$0xff]   ;;  %v1136_v50 = vld [vmem:[%s1627_s1 + $0xf4] ss:$8 sps:$4 sm:$0xff]   ;;  %v1147_v51 = vld [vmem:[%s1628_s0 + $0x38] ss:$12 sps:$4 sm:$0xff]  }
  0x12   :  { %722 = vmatprep.subr.bf16.mxu0 %v1115_v23  ;;  %v1138_v52 = vld [vmem:[%s1627_s1 + $0xf0] ss:$8 sps:$4 sm:$0xff]   ;;  %v1140_v53 = vld [vmem:[%s1628_s0] ss:$12 sps:$4 sm:$0xff]   ;;  %v1144_v54 = vld [vmem:[%s1628_s0 + $0x1c] ss:$12 sps:$4 sm:$0xff]  }
  0x13   :  { %562 = vmatpush1.bf16.msra.mxu1 %v1081_v14  ;;  %v1151_v55 = vld [vmem:[%s1628_s0 + $0x50] ss:$12 sps:$4 sm:$0xff]   ;;  %v1146_v56 = vld [vmem:[%s1628_s0 + $0x18] ss:$12 sps:$4 sm:$0xff]   ;;  %v1148_v57 = vld [vmem:[%s1628_s0 + $0x34] ss:$12 sps:$4 sm:$0xff]  }
  0x14   :  { %563 = vmatprep.subr.bf16.mxu1 %v1082_v15  ;;  %v1155_v58 = vld [vmem:[%s1628_s0 + $0x68] ss:$12 sps:$4 sm:$0xff]   ;;  %v1150_v59 = vld [vmem:[%s1628_s0 + $0x30] ss:$12 sps:$4 sm:$0xff]   ;;  %v1152_v60 = vld [vmem:[%s1628_s0 + $0x4c] ss:$12 sps:$4 sm:$0xff]  }
  0x15   :  { %723 = vmatpush1.bf16.msra.mxu0 %v1117_v25  ;;  %v1159_v61 = vld [vmem:[%s1628_s0 + $0x80] ss:$12 sps:$4 sm:$0xff]   ;;  %v1154_v62 = vld [vmem:[%s1628_s0 + $0x48] ss:$12 sps:$4 sm:$0xff]   ;;  %v1156_v63 = vld [vmem:[%s1628_s0 + $0x64] ss:$12 sps:$4 sm:$0xff]  }
  0x16   :  { %724 = vmatprep.subr.bf16.mxu0 %v1121_v27  ;;  %v1163_v0 = vld [vmem:[%s1628_s0 + $0x98] ss:$12 sps:$4 sm:$0xff]   ;;  %v1158_v2 = vld [vmem:[%s1628_s0 + $0x60] ss:$12 sps:$4 sm:$0xff]   ;;  %v1160_v3 = vld [vmem:[%s1628_s0 + $0x7c] ss:$12 sps:$4 sm:$0xff]  }
  0x17   :  { %564 = vmatpush1.bf16.msra.mxu1 %v1084_v18  ;;  %v1167_v4 = vld [vmem:[%s1628_s0 + $0xb0] ss:$12 sps:$4 sm:$0xff]   ;;  %v1162_v5 = vld [vmem:[%s1628_s0 + $0x78] ss:$12 sps:$4 sm:$0xff]   ;;  %v1164_v6 = vld [vmem:[%s1628_s0 + $0x94] ss:$12 sps:$4 sm:$0xff]  }
  0x18   :  { %565 = vmatprep.subr.bf16.mxu1 %v1085_v20  ;;  %v1171_v7 = vld [vmem:[%s1628_s0 + $0xc8] ss:$12 sps:$4 sm:$0xff]   ;;  %v1166_v8 = vld [vmem:[%s1628_s0 + $0x90] ss:$12 sps:$4 sm:$0xff]   ;;  %v1168_v9 = vld [vmem:[%s1628_s0 + $0xac] ss:$12 sps:$4 sm:$0xff]  }
  0x19   :  { %725 = vmatpush1.bf16.msra.mxu0 %v1123_v29  ;;  %v1175_v10 = vld [vmem:[%s1628_s0 + $0xe0] ss:$12 sps:$4 sm:$0xff]   ;;  %v1170_v11 = vld [vmem:[%s1628_s0 + $0xa8] ss:$12 sps:$4 sm:$0xff]   ;;  %v1172_v12 = vld [vmem:[%s1628_s0 + $0xc4] ss:$12 sps:$4 sm:$0xff]  }
  0x1a   :  { %726 = vmatprep.subr.bf16.mxu0 %v1127_v31  ;;  %v1179_v13 = vld [vmem:[%s1628_s0 + $0xf8] ss:$12 sps:$4 sm:$0xff]   ;;  %v1174_v14 = vld [vmem:[%s1628_s0 + $0xc0] ss:$12 sps:$4 sm:$0xff]   ;;  %v1176_v15 = vld [vmem:[%s1628_s0 + $0xdc] ss:$12 sps:$4 sm:$0xff]  }
  0x1b   :  { %566 = vmatpush1.bf16.msra.mxu1 %v1087_v22  ;;  %v1183_v16 = vld [vmem:[%s1628_s0 + $0x110] ss:$12 sps:$4 sm:$0xff]   ;;  %v1178_v17 = vld [vmem:[%s1628_s0 + $0xd8] ss:$12 sps:$4 sm:$0xff]   ;;  %v1180_v18 = vld [vmem:[%s1628_s0 + $0xf4] ss:$12 sps:$4 sm:$0xff]  }
  0x1c   :  { %567 = vmatprep.subr.bf16.mxu1 %v1088_v24  ;;  %v1187_v19 = vld [vmem:[%s1628_s0 + $0x128] ss:$0 sps:$4 sm:$0x33]   ;;  %v1182_v20 = vld [vmem:[%s1628_s0 + $0xf0] ss:$12 sps:$4 sm:$0xff]  }
  0x1d   :  { %727 = vmatpush1.bf16.msra.mxu0 %v1129_v34  ;;  %v1184_v21 = vld [vmem:[%s1628_s0 + $0x10c] ss:$12 sps:$4 sm:$0xff]   ;;  %v1186_v22 = vld [vmem:[%s1628_s0 + $0x108] ss:$12 sps:$4 sm:$0xff]  }
  0x1e   :  { %728 = vmatprep.subr.bf16.mxu0 %v1133_v36 }
  0x1f   :  { %568 = vmatpush1.bf16.msra.mxu1 %v1090_v26 }
  0x20   :  { %569 = vmatprep.subr.bf16.mxu1 %v1094_v28 }
  0x21   :  { %729 = vmatpush1.bf16.msra.mxu0 %v1135_v38 }
  0x23   :  { %570 = vmatpush1.bf16.msra.mxu1 %v1096_v30 }
  0x24   :  { %571 = vmatprep.subr.bf16.mxu1 %v1100_v32  ;;  %747 = vmatmul.mubr.bf16.vlgmr.msra.gmra.mrb[0].mxu0 %v1139_v41 }
  0x25   :  { %756 = vmatprep.mubr.bf16.mxu0 %v1190_v1 }
  0x27   :  { %572 = vmatpush1.bf16.msra.mxu1 %v1102_v33 }
  0x28   :  { %573 = vmatprep.subr.bf16.mxu1 %v1106_v37 }
  0x2b   :  { %574 = vmatpush1.bf16.msra.mxu1 %v1108_v39 }
  0x2c   :  { %575 = vmatprep.subr.bf16.mxu1 %v1112_v40  ;;  %757 = vmatmul.mubr.bf16.gmra.mrb[4].mxu0 %v1143_v46 }
  0x2d   :  { %766 = vmatprep.mubr.bf16.mxu0 %v1190_v1 }
  0x2f   :  { %576 = vmatpush1.bf16.msra.mxu1 %v1114_v42 }
  0x30   :  { %577 = vmatprep.subr.bf16.mxu1 %v1118_v43 }
  0x33   :  { %578 = vmatpush1.bf16.msra.mxu1 %v1120_v44 }
  0x34   :  { %579 = vmatprep.subr.bf16.mxu1 %v1124_v45  ;;  %767 = vmatmul.mubr.bf16.gmra.mrb[8].mxu0 %v1147_v51 }
  0x35   :  { %776 = vmatprep.mubr.bf16.mxu0 %v1190_v1 }
  0x37   :  { %580 = vmatpush1.bf16.msra.mxu1 %v1126_v47 }
  0x38   :  { %581 = vmatprep.subr.bf16.mxu1 %v1130_v48 }
  0x3b   :  { %582 = vmatpush1.bf16.msra.mxu1 %v1132_v49 }
  0x3c   :  { %583 = vmatprep.subr.bf16.mxu1 %v1136_v50  ;;  %777 = vmatmul.mubr.bf16.gmra.mrb[12].mxu0 %v1151_v55 }
  0x3d   :  { %786 = vmatprep.mubr.bf16.mxu0 %v1190_v1 }
  0x3f   :  { %584 = vmatpush1.bf16.msra.mxu1 %v1138_v52 }
  0x42   :  { %586 = vmatmul.mubr.bf16.vlgmr.msra.gmra.mrb[0].mxu1 %v1140_v53 }
  0x43   :  { %595 = vmatprep.mubr.bf16.mxu1 %v1144_v54 }
  0x44   :  { %787 = vmatmul.mubr.bf16.gmra.mrb[16].mxu0 %v1155_v58 }
  0x45   :  { %796 = vmatprep.mubr.bf16.mxu0 %v1190_v1 }
  0x4a   :  { %596 = vmatmul.mubr.bf16.gmra.mrb[4].mxu1 %v1146_v56 }
  0x4b   :  { %605 = vmatprep.mubr.bf16.mxu1 %v1148_v57 }
  0x4c   :  { %797 = vmatmul.mubr.bf16.gmra.mrb[20].mxu0 %v1159_v61 }
  0x4d   :  { %806 = vmatprep.mubr.bf16.mxu0 %v1190_v1 }
  0x52   :  { %606 = vmatmul.mubr.bf16.gmra.mrb[8].mxu1 %v1150_v59 }
  0x53   :  { %615 = vmatprep.mubr.bf16.mxu1 %v1152_v60 }
  0x54   :  { %807 = vmatmul.mubr.bf16.gmra.mrb[24].mxu0 %v1163_v0 }
  0x55   :  { %816 = vmatprep.mubr.bf16.mxu0 %v1190_v1 }
  0x5a   :  { %616 = vmatmul.mubr.bf16.gmra.mrb[12].mxu1 %v1154_v62 }
  0x5b   :  { %625 = vmatprep.mubr.bf16.mxu1 %v1156_v63 }
  0x5c   :  { %817 = vmatmul.mubr.bf16.gmra.mrb[28].mxu0 %v1167_v4 }
  0x5d   :  { %826 = vmatprep.mubr.bf16.mxu0 %v1190_v1 }
  0x62   :  { %626 = vmatmul.mubr.bf16.gmra.mrb[16].mxu1 %v1158_v2 }
  0x63   :  { %635 = vmatprep.mubr.bf16.mxu1 %v1160_v3 }
  0x64   :  { %827 = vmatmul.mubr.bf16.gmra.mrb[32].mxu0 %v1171_v7 }
  0x65   :  { %836 = vmatprep.mubr.bf16.mxu0 %v1190_v1 }
  0x6a   :  { %636 = vmatmul.mubr.bf16.gmra.mrb[20].mxu1 %v1162_v5 }
  0x6b   :  { %645 = vmatprep.mubr.bf16.mxu1 %v1164_v6 }
  0x6c   :  { %837 = vmatmul.mubr.bf16.gmra.mrb[36].mxu0 %v1175_v10 }
  0x6d   :  { %846 = vmatprep.mubr.bf16.mxu0 %v1190_v1 }
  0x72   :  { %646 = vmatmul.mubr.bf16.gmra.mrb[24].mxu1 %v1166_v8 }
  0x73   :  { %655 = vmatprep.mubr.bf16.mxu1 %v1168_v9 }
  0x74   :  { %847 = vmatmul.mubr.bf16.gmra.mrb[40].mxu0 %v1179_v13 }
  0x75   :  { %856 = vmatprep.mubr.bf16.mxu0 %v1190_v1 }
  0x7a   :  { %656 = vmatmul.mubr.bf16.gmra.mrb[28].mxu1 %v1170_v11 }
  0x7b   :  { %665 = vmatprep.mubr.bf16.mxu1 %v1172_v12 }
  0x7c   :  { %857 = vmatmul.mubr.bf16.gmra.mrb[44].mxu0 %v1183_v16 }
  0x7d   :  { %866 = vmatprep.mubr.bf16.mxu0 %v1190_v1  ;;  %v60_v1 = vld [vmem:[%s1628_s0 + $0x120] sm:$0x33] }
  0x7e   :  { %v966_v23 = vcombine.high %v60_v1, %v60_v1  ;;  %v965_v24 = vcombine.low %v60_v1, %v60_v1 }
  0x82   :  { %666 = vmatmul.mubr.bf16.gmra.mrb[32].mxu1 %v1174_v14 }
  0x83   :  { %675 = vmatprep.mubr.bf16.mxu1 %v1176_v15 }
  0x84   :  { %867 = vmatmul.mubr.bf16.gmra.mrb[48].mxu0 %v1187_v19 }
  0x8a   :  { %676 = vmatmul.mubr.bf16.gmra.mrb[36].mxu1 %v1178_v17 }
  0x8b   :  { %685 = vmatprep.mubr.bf16.mxu1 %v1180_v18 }
  0x92   :  { %686 = vmatmul.mubr.bf16.gmra.mrb[40].mxu1 %v1182_v20 }
  0x93   :  { %695 = vmatprep.mubr.bf16.mxu1 %v1184_v21 }
  0x9a   :  { %696 = vmatmul.mubr.bf16.gmra.mrb[44].mxu1 %v1186_v22 }
  0x9b   :  { %705 = vmatprep.mubr.bf16.mxu1 %v966_v23 }
  0xa2   :  { %706 = vmatmul.mubr.bf16.gmra.mrb[48].mxu1 %v965_v24 }
  0xf7   :  { %v748_v25 = vpop.f32.mrb[0].mxu0 }
  0xf8   :  { %v750_v26 = vpop.f32.mrb[1].mxu0 }
  0xf9   :  { %v752_v27 = vpop.f32.mrb[2].mxu0 }
  0xfa   :  { %v754_v28 = vpop.f32.mrb[3].mxu0 }
  0xff   :  { %v758_v29 = vpop.f32.mrb[4].mxu0 }
 0x100   :  { %v760_v30 = vpop.f32.mrb[5].mxu0 }
 0x101   :  { %v762_v31 = vpop.f32.mrb[6].mxu0 }
 0x102   :  { %v764_v32 = vpop.f32.mrb[7].mxu0 }
 0x107   :  { %v768_v33 = vpop.f32.mrb[8].mxu0 }
 0x108   :  { %v770_v34 = vpop.f32.mrb[9].mxu0 }
 0x109   :  { %v772_v35 = vpop.f32.mrb[10].mxu0 }
 0x10a   :  { %v774_v36 = vpop.f32.mrb[11].mxu0 }
 0x10f   :  { %v778_v44 = vpop.f32.mrb[12].mxu0 }
 0x110   :  { %v780_v46 = vpop.f32.mrb[13].mxu0 }
 0x111   :  { %v782_v47 = vpop.f32.mrb[14].mxu0 }
 0x112   :  { %v784_v48 = vpop.f32.mrb[15].mxu0 }
 0x115   :  { %v587_v37 = vpop.f32.mrb[0].mxu1 }
 0x116   :  { %v749_v38 = vadd.f32 %v748_v25, %v587_v37  ;;  %v589_v39 = vpop.f32.mrb[1].mxu1 }
 0x117   :  { %v751_v40 = vadd.f32 %v750_v26, %v589_v39  ;;  %v591_v41 = vpop.f32.mrb[2].mxu1  ;;  %v788_v56 = vpop.f32.mrb[16].mxu0 }
 0x118   :  { %875 = vst [vmem:[%s1629_s2] sm:$0xff] %v749_v38  ;;  %v753_v42 = vadd.f32 %v752_v27, %v591_v41  ;;  %v593_v43 = vpop.f32.mrb[3].mxu1  ;;  %v790_v58 = vpop.f32.mrb[17].mxu0 }
 0x119   :  { %876 = vst [vmem:[%s1629_s2 + $0x8] sm:$0xff] %v751_v40  ;;  %v755_v45 = vadd.f32 %v754_v28, %v593_v43  ;;  %v792_v59 = vpop.f32.mrb[18].mxu0 }
 0x11a   :  { %877 = vst [vmem:[%s1629_s2 + $0x10] sm:$0xff] %v753_v42  ;;  %v794_v60 = vpop.f32.mrb[19].mxu0 }
 0x11b   :  { %878 = vst [vmem:[%s1629_s2 + $0x18] sm:$0xff] %v755_v45 }
 0x11d   :  { %v597_v49 = vpop.f32.mrb[4].mxu1 }
 0x11e   :  { %v759_v50 = vadd.f32 %v758_v29, %v597_v49  ;;  %v599_v51 = vpop.f32.mrb[5].mxu1 }
 0x11f   :  { %v761_v52 = vadd.f32 %v760_v30, %v599_v51  ;;  %v601_v53 = vpop.f32.mrb[6].mxu1  ;;  %v798_v5 = vpop.f32.mrb[20].mxu0 }
 0x120   :  { %879 = vst [vmem:[%s1629_s2 + $0x20] sm:$0xff] %v759_v50  ;;  %v763_v54 = vadd.f32 %v762_v31, %v601_v53  ;;  %v603_v55 = vpop.f32.mrb[7].mxu1  ;;  %v800_v7 = vpop.f32.mrb[21].mxu0 }
 0x121   :  { %880 = vst [vmem:[%s1629_s2 + $0x28] sm:$0xff] %v761_v52  ;;  %v765_v57 = vadd.f32 %v764_v32, %v603_v55  ;;  %v802_v8 = vpop.f32.mrb[22].mxu0 }
 0x122   :  { %881 = vst [vmem:[%s1629_s2 + $0x30] sm:$0xff] %v763_v54  ;;  %v804_v9 = vpop.f32.mrb[23].mxu0 }
 0x123   :  { %882 = vst [vmem:[%s1629_s2 + $0x38] sm:$0xff] %v765_v57 }
 0x125   :  { %v607_v61 = vpop.f32.mrb[8].mxu1 }
 0x126   :  { %v769_v62 = vadd.f32 %v768_v33, %v607_v61  ;;  %v609_v63 = vpop.f32.mrb[9].mxu1 }
 0x127   :  { %v771_v0 = vadd.f32 %v770_v34, %v609_v63  ;;  %v611_v2 = vpop.f32.mrb[10].mxu1  ;;  %v808_v17 = vpop.f32.mrb[24].mxu0 }
 0x128   :  { %883 = vst [vmem:[%s1629_s2 + $0x40] sm:$0xff] %v769_v62  ;;  %v773_v3 = vadd.f32 %v772_v35, %v611_v2  ;;  %v613_v4 = vpop.f32.mrb[11].mxu1  ;;  %v810_v19 = vpop.f32.mrb[25].mxu0 }
 0x129   :  { %884 = vst [vmem:[%s1629_s2 + $0x48] sm:$0xff] %v771_v0  ;;  %v775_v6 = vadd.f32 %v774_v36, %v613_v4  ;;  %v812_v20 = vpop.f32.mrb[26].mxu0 }
 0x12a   :  { %885 = vst [vmem:[%s1629_s2 + $0x50] sm:$0xff] %v773_v3  ;;  %v814_v21 = vpop.f32.mrb[27].mxu0 }
 0x12b   :  { %886 = vst [vmem:[%s1629_s2 + $0x58] sm:$0xff] %v775_v6 }
 0x12d   :  { %v617_v10 = vpop.f32.mrb[12].mxu1 }
 0x12e   :  { %v779_v11 = vadd.f32 %v778_v44, %v617_v10  ;;  %v619_v12 = vpop.f32.mrb[13].mxu1 }
 0x12f   :  { %v781_v13 = vadd.f32 %v780_v46, %v619_v12  ;;  %v621_v14 = vpop.f32.mrb[14].mxu1  ;;  %v818_v28 = vpop.f32.mrb[28].mxu0 }
 0x130   :  { %887 = vst [vmem:[%s1629_s2 + $0x60] sm:$0xff] %v779_v11  ;;  %v783_v15 = vadd.f32 %v782_v47, %v621_v14  ;;  %v623_v16 = vpop.f32.mrb[15].mxu1  ;;  %v820_v30 = vpop.f32.mrb[29].mxu0 }
 0x131   :  { %888 = vst [vmem:[%s1629_s2 + $0x68] sm:$0xff] %v781_v13  ;;  %v785_v18 = vadd.f32 %v784_v48, %v623_v16  ;;  %v822_v31 = vpop.f32.mrb[30].mxu0 }
 0x132   :  { %889 = vst [vmem:[%s1629_s2 + $0x70] sm:$0xff] %v783_v15  ;;  %v824_v32 = vpop.f32.mrb[31].mxu0 }
 0x133   :  { %890 = vst [vmem:[%s1629_s2 + $0x78] sm:$0xff] %v785_v18 }
 0x135   :  { %v627_v1 = vpop.f32.mrb[16].mxu1 }
 0x136   :  { %v789_v22 = vadd.f32 %v788_v56, %v627_v1  ;;  %v629_v23 = vpop.f32.mrb[17].mxu1 }
 0x137   :  { %v791_v24 = vadd.f32 %v790_v58, %v629_v23  ;;  %v631_v25 = vpop.f32.mrb[18].mxu1  ;;  %v828_v40 = vpop.f32.mrb[32].mxu0 }
 0x138   :  { %891 = vst [vmem:[%s1629_s2 + $0x80] sm:$0xff] %v789_v22  ;;  %v793_v26 = vadd.f32 %v792_v59, %v631_v25  ;;  %v633_v27 = vpop.f32.mrb[19].mxu1  ;;  %v830_v42 = vpop.f32.mrb[33].mxu0 }
 0x139   :  { %892 = vst [vmem:[%s1629_s2 + $0x88] sm:$0xff] %v791_v24  ;;  %v795_v29 = vadd.f32 %v794_v60, %v633_v27  ;;  %v832_v43 = vpop.f32.mrb[34].mxu0 }
 0x13a   :  { %893 = vst [vmem:[%s1629_s2 + $0x90] sm:$0xff] %v793_v26  ;;  %v834_v44 = vpop.f32.mrb[35].mxu0 }
 0x13b   :  { %894 = vst [vmem:[%s1629_s2 + $0x98] sm:$0xff] %v795_v29 }
 0x13d   :  { %v637_v33 = vpop.f32.mrb[20].mxu1 }
 0x13e   :  { %v799_v34 = vadd.f32 %v798_v5, %v637_v33  ;;  %v639_v35 = vpop.f32.mrb[21].mxu1 }
 0x13f   :  { %v801_v36 = vadd.f32 %v800_v7, %v639_v35  ;;  %v641_v37 = vpop.f32.mrb[22].mxu1  ;;  %v838_v52 = vpop.f32.mrb[36].mxu0 }
 0x140   :  { %895 = vst [vmem:[%s1629_s2 + $0xa0] sm:$0xff] %v799_v34  ;;  %v803_v38 = vadd.f32 %v802_v8, %v641_v37  ;;  %v643_v39 = vpop.f32.mrb[23].mxu1  ;;  %v840_v54 = vpop.f32.mrb[37].mxu0 }
 0x141   :  { %896 = vst [vmem:[%s1629_s2 + $0xa8] sm:$0xff] %v801_v36  ;;  %v805_v41 = vadd.f32 %v804_v9, %v643_v39  ;;  %v842_v55 = vpop.f32.mrb[38].mxu0 }
 0x142   :  { %897 = vst [vmem:[%s1629_s2 + $0xb0] sm:$0xff] %v803_v38  ;;  %v844_v56 = vpop.f32.mrb[39].mxu0 }
 0x143   :  { %898 = vst [vmem:[%s1629_s2 + $0xb8] sm:$0xff] %v805_v41 }
 0x145   :  { %v647_v45 = vpop.f32.mrb[24].mxu1 }
 0x146   :  { %v809_v46 = vadd.f32 %v808_v17, %v647_v45  ;;  %v649_v47 = vpop.f32.mrb[25].mxu1 }
 0x147   :  { %v811_v48 = vadd.f32 %v810_v19, %v649_v47  ;;  %v651_v49 = vpop.f32.mrb[26].mxu1  ;;  %v848_v0 = vpop.f32.mrb[40].mxu0 }
 0x148   :  { %899 = vst [vmem:[%s1629_s2 + $0xc0] sm:$0xff] %v809_v46  ;;  %v813_v50 = vadd.f32 %v812_v20, %v651_v49  ;;  %v653_v51 = vpop.f32.mrb[27].mxu1  ;;  %v850_v3 = vpop.f32.mrb[41].mxu0 }
 0x149   :  { %900 = vst [vmem:[%s1629_s2 + $0xc8] sm:$0xff] %v811_v48  ;;  %v815_v53 = vadd.f32 %v814_v21, %v653_v51  ;;  %v852_v4 = vpop.f32.mrb[42].mxu0 }
 0x14a   :  { %901 = vst [vmem:[%s1629_s2 + $0xd0] sm:$0xff] %v813_v50  ;;  %v854_v5 = vpop.f32.mrb[43].mxu0 }
 0x14b   :  { %902 = vst [vmem:[%s1629_s2 + $0xd8] sm:$0xff] %v815_v53 }
 0x14d   :  { %v657_v57 = vpop.f32.mrb[28].mxu1 }
 0x14e   :  { %v819_v58 = vadd.f32 %v818_v28, %v657_v57  ;;  %v659_v59 = vpop.f32.mrb[29].mxu1 }
 0x14f   :  { %v821_v60 = vadd.f32 %v820_v30, %v659_v59  ;;  %v661_v61 = vpop.f32.mrb[30].mxu1  ;;  %v858_v13 = vpop.f32.mrb[44].mxu0 }
 0x150   :  { %903 = vst [vmem:[%s1629_s2 + $0xe0] sm:$0xff] %v819_v58  ;;  %v823_v62 = vadd.f32 %v822_v31, %v661_v61  ;;  %v663_v63 = vpop.f32.mrb[31].mxu1  ;;  %v860_v15 = vpop.f32.mrb[45].mxu0 }
 0x151   :  { %904 = vst [vmem:[%s1629_s2 + $0xe8] sm:$0xff] %v821_v60  ;;  %v825_v2 = vadd.f32 %v824_v32, %v663_v63  ;;  %v862_v16 = vpop.f32.mrb[46].mxu0 }
 0x152   :  { %905 = vst [vmem:[%s1629_s2 + $0xf0] sm:$0xff] %v823_v62  ;;  %v864_v17 = vpop.f32.mrb[47].mxu0 }
 0x153   :  { %906 = vst [vmem:[%s1629_s2 + $0xf8] sm:$0xff] %v825_v2 }
 0x155   :  { %v667_v6 = vpop.f32.mrb[32].mxu1 }
 0x156   :  { %v829_v7 = vadd.f32 %v828_v40, %v667_v6  ;;  %v669_v8 = vpop.f32.mrb[33].mxu1 }
 0x157   :  { %v831_v9 = vadd.f32 %v830_v42, %v669_v8  ;;  %v671_v10 = vpop.f32.mrb[34].mxu1  ;;  %v868_v24 = vpop.f32.mrb[48].mxu0 }
 0x158   :  { %907 = vst [vmem:[%s1629_s2 + $0x100] sm:$0xff] %v829_v7  ;;  %v833_v11 = vadd.f32 %v832_v43, %v671_v10  ;;  %v673_v12 = vpop.f32.mrb[35].mxu1  ;;  %v870_v26 = vpop.f32.mrb[49].mxu0 }
 0x159   :  { %908 = vst [vmem:[%s1629_s2 + $0x108] sm:$0xff] %v831_v9  ;;  %v835_v14 = vadd.f32 %v834_v44, %v673_v12  ;;  %v872_v27 = vpop.f32.mrb[50].mxu0 }
 0x15a   :  { %909 = vst [vmem:[%s1629_s2 + $0x110] sm:$0xff] %v833_v11  ;;  %v873_v28 = vpop.f32.mrb[51].mxu0 }
 0x15b   :  { %910 = vst [vmem:[%s1629_s2 + $0x118] sm:$0xff] %v835_v14 }
 0x15d   :  { %v677_v18 = vpop.f32.mrb[36].mxu1 }
 0x15e   :  { %v839_v19 = vadd.f32 %v838_v52, %v677_v18  ;;  %v679_v20 = vpop.f32.mrb[37].mxu1 }
 0x15f   :  { %v841_v21 = vadd.f32 %v840_v54, %v679_v20  ;;  %v681_v1 = vpop.f32.mrb[38].mxu1 }
 0x160   :  { %911 = vst [vmem:[%s1629_s2 + $0x120] sm:$0xff] %v839_v19  ;;  %v843_v22 = vadd.f32 %v842_v55, %v681_v1  ;;  %v683_v23 = vpop.f32.mrb[39].mxu1 }
 0x161   :  { %912 = vst [vmem:[%s1629_s2 + $0x128] sm:$0xff] %v841_v21  ;;  %v845_v25 = vadd.f32 %v844_v56, %v683_v23 }
 0x162   :  { %913 = vst [vmem:[%s1629_s2 + $0x130] sm:$0xff] %v843_v22 }
 0x163   :  { %914 = vst [vmem:[%s1629_s2 + $0x138] sm:$0xff] %v845_v25 }
 0x165   :  { %v687_v29 = vpop.f32.mrb[40].mxu1 }
 0x166   :  { %v849_v30 = vadd.f32 %v848_v0, %v687_v29  ;;  %v689_v31 = vpop.f32.mrb[41].mxu1 }
 0x167   :  { %v851_v32 = vadd.f32 %v850_v3, %v689_v31  ;;  %v691_v33 = vpop.f32.mrb[42].mxu1 }
 0x168   :  { %915 = vst [vmem:[%s1629_s2 + $0x140] sm:$0xff] %v849_v30  ;;  %v853_v34 = vadd.f32 %v852_v4, %v691_v33  ;;  %v693_v35 = vpop.f32.mrb[43].mxu1 }
 0x169   :  { %916 = vst [vmem:[%s1629_s2 + $0x148] sm:$0xff] %v851_v32  ;;  %v855_v36 = vadd.f32 %v854_v5, %v693_v35 }
 0x16a   :  { %917 = vst [vmem:[%s1629_s2 + $0x150] sm:$0xff] %v853_v34 }
 0x16b   :  { %918 = vst [vmem:[%s1629_s2 + $0x158] sm:$0xff] %v855_v36 }
 0x16d   :  { %v697_v37 = vpop.f32.mrb[44].mxu1 }
 0x16e   :  { %v859_v38 = vadd.f32 %v858_v13, %v697_v37  ;;  %v699_v39 = vpop.f32.mrb[45].mxu1 }
 0x16f   :  { %v861_v40 = vadd.f32 %v860_v15, %v699_v39  ;;  %v701_v41 = vpop.f32.mrb[46].mxu1 }
 0x170   :  { %919 = vst [vmem:[%s1629_s2 + $0x160] sm:$0xff] %v859_v38  ;;  %v863_v42 = vadd.f32 %v862_v16, %v701_v41  ;;  %v703_v43 = vpop.f32.mrb[47].mxu1 }
 0x171   :  { %920 = vst [vmem:[%s1629_s2 + $0x168] sm:$0xff] %v861_v40  ;;  %v865_v44 = vadd.f32 %v864_v17, %v703_v43 }
 0x172   :  { %921 = vst [vmem:[%s1629_s2 + $0x170] sm:$0xff] %v863_v42 }
 0x173   :  { %922 = vst [vmem:[%s1629_s2 + $0x178] sm:$0xff] %v865_v44 }
 0x175   :  { %v707_v45 = vpop.f32.mrb[48].mxu1 }
 0x176   :  { %v869_v46 = vadd.f32 %v868_v24, %v707_v45  ;;  %v709_v47 = vpop.f32.mrb[49].mxu1 }
 0x177   :  { %v871_v48 = vadd.f32 %v870_v26, %v709_v47  ;;  %v711_v49 = vpop.f32.mrb[50].mxu1 }
 0x178   :  { %923 = vst [vmem:[%s1629_s2 + $0x180] sm:$0xf] %v869_v46  ;;  %v712_v50 = vpop.f32.mrb[51].mxu1 }
 0x179   :  { %924 = vst [vmem:[%s1629_s2 + $0x188] sm:$0xf] %v871_v48 }

</bundles_post_ra>
